<compile_context>
chip_gen: v6e
topology: v6e:2x2x1
jax: 0.10.0
libtpu: 0.0.40
codegen_flags: <defaults>
</compile_context>

<pallas_src>
import jax
import jax.numpy as jnp
from jax.experimental import pallas as pl
from jax.experimental.pallas import tpu as pltpu


def _vmem_capacity_bytes():
    """Per-generation VMEM capacity; conservative fallback is v7x's 64 MiB."""
    try:
        return int(pltpu.get_tpu_info().vmem_capacity_bytes)
    except Exception:
        return 64 * 1024 * 1024


def _clean_divisors(total):
    """Divisors of `total` that keep BlockSpec sublane tiling clean:
    either the full extent or a multiple of 8."""
    return sorted(
        d for d in range(1, total + 1)
        if total % d == 0 and (d == total or d % 8 == 0))


def _select_tiles(B, N, Dx, Dy, widest, h_pre, d_out, param_bytes, budget,
                  target_rows=2048):
    """Pick (tile_b, tile_n) from the VMEM budget.  Prefer the full context
    extent per step (fewest reduction steps), then the smallest batch tile
    whose rows-per-step reach `target_rows` (else the largest feasible)."""

    def est(tb, tn):
        rows = tb * tn
        return (2 * 4 * rows * (Dx + Dy)   # double-buffered x / y input tiles
                + 2 * 4 * rows * widest    # two live activation slabs
                + 4 * tb * h_pre           # accumulator scratch
                + 2 * 4 * tb * d_out       # double-buffered output tile
                + param_bytes)             # resident (single-buffered) params

    tb_all = _clean_divisors(B)
    # Keep >= 2 batch grid steps when a clean divisor allows it, so the
    # "parallel" batch axis can shard across v7x's two TensorCores.
    tb_capped = [d for d in tb_all if d <= max(1, B // 2)]
    tb_candidates = tb_capped if tb_capped else tb_all

    for tn in reversed(_clean_divisors(N)):            # largest tile_n first
        feasible = [tb for tb in tb_candidates if est(tb, tn) <= budget]
        if not feasible:
            continue
        reaching = [tb for tb in feasible if tb * tn >= target_rows]
        return (min(reaching) if reaching else max(feasible)), tn
    return 1, _clean_divisors(N)[0]


def _make_encoder_kernel(n_layers, tile_b, tile_n, n_ctx):
    """Kernel closure over a fixed MLP depth and (batch, context) tile."""
    inv_n = 1.0 / float(n_ctx)

    def kernel(x_ref, y_ref, *refs):
        # refs = (w0x, w0y, b0, w1, b1, ..., w_{L-1}, b_{L-1}, out_ref, acc_ref)
        acc_ref = refs[-1]
        out_ref = refs[-2]
        params = refs[:-2]

        rows = tile_b * tile_n
        w0x = params[0][...]
        w0y = params[1][...]
        # Collapse (TILE_B, TILE_N, D) -> (TILE_B*TILE_N, D); astype is a no-op
        # in the default f32 path and enables the bf16 MXU-operand path.
        x2d = x_ref[...].reshape(rows, x_ref.shape[-1]).astype(w0x.dtype)
        y2d = y_ref[...].reshape(rows, y_ref.shape[-1]).astype(w0y.dtype)

        # Layer 0 in split-weight form: concat([x, y], -1) @ W0 == x@W0x + y@W0y.
        h = (jnp.dot(x2d, w0x, preferred_element_type=jnp.float32)
             + jnp.dot(y2d, w0y, preferred_element_type=jnp.float32))
        if n_layers > 1:
            h = jnp.maximum(h + params[2][...], 0.0)        # bias + ReLU (layer 0)
            for i in range(1, n_layers - 1):                # hidden layers 1..L-2
                w = params[3 + 2 * (i - 1)][...]
                b = params[4 + 2 * (i - 1)][...]
                h = jnp.maximum(
                    jnp.dot(h.astype(w.dtype), w,
                            preferred_element_type=jnp.float32) + b, 0.0)
        # For n_layers == 1 the single layer IS the final affine layer; its
        # bias is added after the mean in the finalize step below.

        # Running sum over the context points of this tile.
        # TODO(synk): for very large tile_n this VPU/XLU reduction could be an
        # MXU pooling matmul (block 1/N matrix) to offload the reduction.
        partial = jnp.sum(h.reshape(tile_b, tile_n, h.shape[-1]), axis=1)

        n_step = pl.program_id(1)

        @pl.when(n_step == 0)
        def _init():
            acc_ref[...] = jnp.zeros_like(acc_ref)

        acc_ref[...] += partial

        @pl.when(n_step == pl.num_programs(1) - 1)
        def _finalize():
            # Mean over context points hoisted through the final layer.
            # Valid only because the reference applies NO activation after it.
            h_mean = acc_ref[...] * inv_n
            if n_layers > 1:
                w_last = params[-2][...]
                out = (jnp.dot(h_mean.astype(w_last.dtype), w_last,
                               preferred_element_type=jnp.float32)
                       + params[-1][...])
            else:
                out = h_mean + params[-1][...]
            out_ref[...] = out.astype(out_ref.dtype)

    return kernel


def deterministic_encoder(context_x, context_y, weights, biases, *,
                          tile_b=None, tile_n=None, use_bf16=False):
    """Pallas implementation of DeterministicEncoder.forward.

    Args:
      context_x: (B, N, Dx) float32
      context_y: (B, N, Dy) float32
      weights:   list of (D_i, D_{i+1}) float32 matrices
      biases:    list of (D_{i+1},) float32 vectors
      use_bf16:  cast MXU weight operands to bf16 (f32 accumulation); loosens
                 tolerance but halves weight VMEM/HBM and raises MXU throughput.
    Returns:
      representation: (B, D_out) float32
    """
    B, N, Dx = context_x.shape
    _, _, Dy = context_y.shape
    n_layers = len(weights)
    assert n_layers >= 1 and len(biases) == n_layers
    D_out = int(weights[-1].shape[1])
    h_pre = int(weights[-2].shape[1]) if n_layers > 1 else D_out
    widest = max([Dx + Dy] + [int(w.shape[1]) for w in weights])

    # Split the first-layer weight so no (B, N, Dx+Dy) concat ever hits HBM.
    w_dtype = jnp.bfloat16 if use_bf16 else jnp.float32
    w0 = weights[0].astype(w_dtype)
    w0x, w0y = w0[:Dx], w0[Dx:]
    biases2d = [b.reshape(1, -1).astype(jnp.float32) for b in biases]
    flat_params = [w0x, w0y, biases2d[0]]
    for w, b2 in zip(weights[1:], biases2d[1:]):
        flat_params.append(w.astype(w_dtype))
        flat_params.append(b2)
    param_bytes = sum(int(p.size) * p.dtype.itemsize for p in flat_params)

    vmem_cap = _vmem_capacity_bytes()
    budget = int(0.75 * vmem_cap)   # tiling budget (leaves compiler headroom)

    if tile_b is None or tile_n is None:
        auto_b, auto_n = _select_tiles(B, N, Dx, Dy, widest, h_pre, D_out,
                                       param_bytes, budget)
        tile_b = auto_b if tile_b is None else tile_b
        tile_n = auto_n if tile_n is None else tile_n
    assert B % tile_b == 0 and N % tile_n == 0

    # Advisory cost estimate for XLA's scheduler (whole call).
    flops = 2 * B * N * (Dx + Dy) * int(weights[0].shape[1])
    for w in weights[1:-1]:
        flops += 2 * B * N * int(w.shape[0]) * int(w.shape[1])
    if n_layers > 1:
        flops += 2 * B * int(weights[-1].shape[0]) * int(weights[-1].shape[1])
    bytes_accessed = (int(context_x.size) * context_x.dtype.itemsize
                      + int(context_y.size) * context_y.dtype.itemsize
                      + 4 * B * D_out + param_bytes)
    cost = pl.CostEstimate(flops=int(flops), transcendentals=0,
                           bytes_accessed=int(bytes_accessed))

    grid = (B // tile_b, N // tile_n)

    def build(single_buffer_params):
        rows = tile_b * tile_n
        param_buffers = 1 if single_buffer_params else 2
        est = (2 * 4 * rows * (Dx + Dy) + 2 * 4 * rows * widest
               + 4 * tile_b * h_pre + 2 * 4 * tile_b * D_out
               + param_buffers * param_bytes)
        vmem_limit = int(min(max(est + (8 << 20), 32 << 20),
                             int(0.9 * vmem_cap)))

        in_specs = [
            pl.BlockSpec((tile_b, tile_n, Dx), lambda b, n: (b, n, 0)),
            pl.BlockSpec((tile_b, tile_n, Dy), lambda b, n: (b, n, 0)),
        ]
        for p in flat_params:
            if single_buffer_params:
                # Constant index map -> resident block; single-buffer it.
                in_specs.append(pl.BlockSpec(p.shape, lambda b, n: (0, 0),
                                             pipeline_mode=pl.Buffered(1)))
            else:
                in_specs.append(pl.BlockSpec(p.shape, lambda b, n: (0, 0)))

        return pl.pallas_call(
            _make_encoder_kernel(n_layers, tile_b, tile_n, N),
            out_shape=jax.ShapeDtypeStruct((B, D_out), jnp.float32),
            grid_spec=pltpu.PrefetchScalarGridSpec(
                num_scalar_prefetch=0,
                grid=grid,
                in_specs=in_specs,
                out_specs=pl.BlockSpec((tile_b, D_out), lambda b, n: (b, 0)),
                scratch_shapes=[pltpu.VMEM((tile_b, h_pre), jnp.float32)],
            ),
            compiler_params=pltpu.CompilerParams(
                dimension_semantics=("parallel", "arbitrary"),
                vmem_limit_bytes=vmem_limit,
            ),
            cost_estimate=cost,
        )

    args = (context_x, context_y, *flat_params)
    try:
        return build(single_buffer_params=True)(*args)
    except Exception:
        # Fallback for jax builds where pipeline_mode=pl.Buffered(1) on a
        # resident parameter BlockSpec is not accepted.
        return build(single_buffer_params=False)(*args)


def _reference(context_x, context_y, weights, biases):
    """Pure-JAX reference matching the PyTorch forward semantics exactly."""
    enc_in = jnp.concatenate([context_x, context_y], axis=-1)
    B, N, _ = enc_in.shape
    h = enc_in.reshape(B * N, -1)
    for i, (w, b) in enumerate(zip(weights, biases)):
        h = h @ w + b
        if i < len(weights) - 1:
            h = jnp.maximum(h, 0.0)
    h = h.reshape(B, N, -1)
    return h.mean(axis=1)


if __name__ == "__main__":
    key = jax.random.PRNGKey(0)

    # Small, module-consistent shapes.
    B, N = 2, 8          # batch, context points
    Dx, Dy = 3, 2        # x-value dim, y-value dim
    D_in = Dx + Dy
    output_sizes = [D_in, 32, 32, 32]  # MLP layer sizes (as in CNP encoders)

    k_x, k_y, k_p = jax.random.split(key, 3)
    context_x = jax.random.normal(k_x, (B, N, Dx), dtype=jnp.float32)
    context_y = jax.random.normal(k_y, (B, N, Dy), dtype=jnp.float32)

    # Deterministic parameter init mimicking nn.Linear (uniform +- 1/sqrt(fan_in)).
    weights, biases = [], []
    pkeys = jax.random.split(k_p, 2 * (len(output_sizes) - 1))
    for i in range(len(output_sizes) - 1):
        fan_in, fan_out = output_sizes[i], output_sizes[i + 1]
        bound = 1.0 / jnp.sqrt(jnp.float32(fan_in))
        w = jax.random.uniform(
            pkeys[2 * i], (fan_in, fan_out), jnp.float32, -bound, bound)
        b = jax.random.uniform(
            pkeys[2 * i + 1], (fan_out,), jnp.float32, -bound, bound)
        weights.append(w)
        biases.append(b)

    out = deterministic_encoder(context_x, context_y, weights, biases)
    out = jax.block_until_ready(out)

    ref = _reference(context_x, context_y, weights, biases)
    assert out.shape == (B, output_sizes[-1]), out.shape
    assert jnp.allclose(out, ref, atol=1e-5, rtol=1e-5), (
        float(jnp.max(jnp.abs(out - ref))))

    print("KERNEL_OK")
</pallas_src>

<mosaic_0001>
module attributes {stable_mosaic.version = 11 : i64} {
  func.func @kernel(%arg0: i32, %arg1: i32, %arg2: memref<2x8x3xf32, #tpu.memory_space<vmem>>, %arg3: memref<2x8x2xf32, #tpu.memory_space<vmem>>, %arg4: memref<3x32xf32, #tpu.memory_space<vmem>>, %arg5: memref<2x32xf32, #tpu.memory_space<vmem>>, %arg6: memref<1x32xf32, #tpu.memory_space<vmem>>, %arg7: memref<32x32xf32, #tpu.memory_space<vmem>>, %arg8: memref<1x32xf32, #tpu.memory_space<vmem>>, %arg9: memref<32x32xf32, #tpu.memory_space<vmem>>, %arg10: memref<1x32xf32, #tpu.memory_space<vmem>>, %arg11: memref<2x32xf32, #tpu.memory_space<vmem>>, %arg12: memref<2x32xf32, #tpu.memory_space<vmem>>) attributes {dimension_semantics = [#tpu.dimension_semantics<parallel>, #tpu.dimension_semantics<arbitrary>], iteration_bounds = array<i64: 1, 1>, scalar_prefetch = 0 : i64, scratch_operands = 1 : i64, tpu.core_type = #tpu.core_type<tc>, window_params = [{transform_indices = @transform_0, window_bounds = array<i64: 2, 8, 3>}, {transform_indices = @transform_1, window_bounds = array<i64: 2, 8, 2>}, {pipeline_mode = #tpu.pipeline_mode<synchronous>, transform_indices = @transform_2, window_bounds = array<i64: 3, 32>}, {pipeline_mode = #tpu.pipeline_mode<synchronous>, transform_indices = @transform_3, window_bounds = array<i64: 2, 32>}, {pipeline_mode = #tpu.pipeline_mode<synchronous>, transform_indices = @transform_4, window_bounds = array<i64: 1, 32>}, {pipeline_mode = #tpu.pipeline_mode<synchronous>, transform_indices = @transform_5, window_bounds = array<i64: 32, 32>}, {pipeline_mode = #tpu.pipeline_mode<synchronous>, transform_indices = @transform_6, window_bounds = array<i64: 1, 32>}, {pipeline_mode = #tpu.pipeline_mode<synchronous>, transform_indices = @transform_7, window_bounds = array<i64: 32, 32>}, {pipeline_mode = #tpu.pipeline_mode<synchronous>, transform_indices = @transform_8, window_bounds = array<i64: 1, 32>}, {transform_indices = @transform_9, window_bounds = array<i64: 2, 32>}]} {
    %c0 = arith.constant 0 : index
    %c0_0 = arith.constant 0 : index
    %0 = vector.load %arg4[%c0, %c0_0] : memref<3x32xf32, #tpu.memory_space<vmem>>, vector<3x32xf32>
    %c0_1 = arith.constant 0 : index
    %c0_2 = arith.constant 0 : index
    %1 = vector.load %arg5[%c0_1, %c0_2] : memref<2x32xf32, #tpu.memory_space<vmem>>, vector<2x32xf32>
    %c0_3 = arith.constant 0 : index
    %c0_4 = arith.constant 0 : index
    %c0_5 = arith.constant 0 : index
    %2 = vector.load %arg2[%c0_3, %c0_4, %c0_5] : memref<2x8x3xf32, #tpu.memory_space<vmem>>, vector<2x8x3xf32>
    %3 = vector.shape_cast %2 : vector<2x8x3xf32> to vector<16x3xf32>
    %c0_6 = arith.constant 0 : index
    %c0_7 = arith.constant 0 : index
    %c0_8 = arith.constant 0 : index
    %4 = vector.load %arg3[%c0_6, %c0_7, %c0_8] : memref<2x8x2xf32, #tpu.memory_space<vmem>>, vector<2x8x2xf32>
    %5 = vector.shape_cast %4 : vector<2x8x2xf32> to vector<16x2xf32>
    %cst = arith.constant dense<0.000000e+00> : vector<16x32xf32>
    %6 = tpu.matmul %3, %0, %cst {dimension_numbers = #tpu.dot_dimension_numbers<[1], [0], [0], [1], [0, 0, 1, 1], [], []>} : vector<16x3xf32>, vector<3x32xf32>, vector<16x32xf32> -> vector<16x32xf32>
    %cst_9 = arith.constant dense<0.000000e+00> : vector<16x32xf32>
    %7 = tpu.matmul %5, %1, %cst_9 {dimension_numbers = #tpu.dot_dimension_numbers<[1], [0], [0], [1], [0, 0, 1, 1], [], []>} : vector<16x2xf32>, vector<2x32xf32>, vector<16x32xf32> -> vector<16x32xf32>
    %8 = arith.addf %6, %7 : vector<16x32xf32>
    %c0_10 = arith.constant 0 : index
    %c0_11 = arith.constant 0 : index
    %9 = vector.load %arg6[%c0_10, %c0_11] : memref<1x32xf32, #tpu.memory_space<vmem>>, vector<1x32xf32>
    %10 = vector.broadcast %9 : vector<1x32xf32> to vector<16x32xf32>
    %11 = arith.addf %8, %10 : vector<16x32xf32>
    %cst_12 = arith.constant 0.000000e+00 : f32
    %12 = vector.broadcast %cst_12 : f32 to vector<16x32xf32>
    %13 = arith.maximumf %11, %12 : vector<16x32xf32>
    %c0_13 = arith.constant 0 : index
    %c0_14 = arith.constant 0 : index
    %14 = vector.load %arg7[%c0_13, %c0_14] : memref<32x32xf32, #tpu.memory_space<vmem>>, vector<32x32xf32>
    %c0_15 = arith.constant 0 : index
    %c0_16 = arith.constant 0 : index
    %15 = vector.load %arg8[%c0_15, %c0_16] : memref<1x32xf32, #tpu.memory_space<vmem>>, vector<1x32xf32>
    %cst_17 = arith.constant dense<0.000000e+00> : vector<16x32xf32>
    %16 = tpu.matmul %13, %14, %cst_17 {dimension_numbers = #tpu.dot_dimension_numbers<[1], [0], [0], [1], [0, 0, 1, 1], [], []>} : vector<16x32xf32>, vector<32x32xf32>, vector<16x32xf32> -> vector<16x32xf32>
    %17 = vector.broadcast %15 : vector<1x32xf32> to vector<16x32xf32>
    %18 = arith.addf %16, %17 : vector<16x32xf32>
    %cst_18 = arith.constant 0.000000e+00 : f32
    %19 = vector.broadcast %cst_18 : f32 to vector<16x32xf32>
    %20 = arith.maximumf %18, %19 : vector<16x32xf32>
    %21 = vector.shape_cast %20 : vector<16x32xf32> to vector<2x8x32xf32>
    %cst_19 = arith.constant dense<0.000000e+00> : vector<2x32xf32>
    %22 = vector.multi_reduction <add>, %21, %cst_19 [1] : vector<2x8x32xf32> to vector<2x32xf32>
    %c0_i32 = arith.constant 0 : i32
    %23 = arith.cmpi eq, %arg1, %c0_i32 : i32
    %24 = arith.extui %23 : i1 to i32
    %c0_i32_20 = arith.constant 0 : i32
    %25 = arith.cmpi ne, %24, %c0_i32_20 : i32
    scf.if %25 {
      %cst_27 = arith.constant 0.000000e+00 : f32
      %32 = vector.broadcast %cst_27 : f32 to vector<2x32xf32>
      %c0_28 = arith.constant 0 : index
      %c0_29 = arith.constant 0 : index
      %33 = vector.load %arg12[%c0_28, %c0_29] : memref<2x32xf32, #tpu.memory_space<vmem>>, vector<2x32xf32>
      tpu.vector_store %arg12[%c0_28, %c0_29], %32 {strides = array<i32>} : memref<2x32xf32, #tpu.memory_space<vmem>>, vector<2x32xf32>,
    } else {
    }
    %c0_21 = arith.constant 0 : index
    %c0_22 = arith.constant 0 : index
    %26 = vector.load %arg12[%c0_21, %c0_22] : memref<2x32xf32, #tpu.memory_space<vmem>>, vector<2x32xf32>
    %27 = arith.addf %26, %22 : vector<2x32xf32>
    %c0_23 = arith.constant 0 : index
    %c0_24 = arith.constant 0 : index
    %28 = vector.load %arg12[%c0_23, %c0_24] : memref<2x32xf32, #tpu.memory_space<vmem>>, vector<2x32xf32>
    tpu.vector_store %arg12[%c0_23, %c0_24], %27 {strides = array<i32>} : memref<2x32xf32, #tpu.memory_space<vmem>>, vector<2x32xf32>,
    %c0_i32_25 = arith.constant 0 : i32
    %29 = arith.cmpi eq, %arg1, %c0_i32_25 : i32
    %30 = arith.extui %29 : i1 to i32
    %c0_i32_26 = arith.constant 0 : i32
    %31 = arith.cmpi ne, %30, %c0_i32_26 : i32
    scf.if %31 {
      %c0_27 = arith.constant 0 : index
      %c0_28 = arith.constant 0 : index
      %32 = vector.load %arg12[%c0_27, %c0_28] : memref<2x32xf32, #tpu.memory_space<vmem>>, vector<2x32xf32>
      %cst_29 = arith.constant 1.250000e-01 : f32
      %33 = vector.broadcast %cst_29 : f32 to vector<2x32xf32>
      %34 = arith.mulf %32, %33 : vector<2x32xf32>
      %c0_30 = arith.constant 0 : index
      %c0_31 = arith.constant 0 : index
      %35 = vector.load %arg9[%c0_30, %c0_31] : memref<32x32xf32, #tpu.memory_space<vmem>>, vector<32x32xf32>
      %cst_32 = arith.constant dense<0.000000e+00> : vector<2x32xf32>
      %36 = tpu.matmul %34, %35, %cst_32 {dimension_numbers = #tpu.dot_dimension_numbers<[1], [0], [0], [1], [0, 0, 1, 1], [], []>} : vector<2x32xf32>, vector<32x32xf32>, vector<2x32xf32> -> vector<2x32xf32>
      %c0_33 = arith.constant 0 : index
      %c0_34 = arith.constant 0 : index
      %37 = vector.load %arg10[%c0_33, %c0_34] : memref<1x32xf32, #tpu.memory_space<vmem>>, vector<1x32xf32>
      %38 = vector.broadcast %37 : vector<1x32xf32> to vector<2x32xf32>
      %39 = arith.addf %36, %38 : vector<2x32xf32>
      %c0_35 = arith.constant 0 : index
      %c0_36 = arith.constant 0 : index
      %40 = vector.load %arg11[%c0_35, %c0_36] : memref<2x32xf32, #tpu.memory_space<vmem>>, vector<2x32xf32>
      tpu.vector_store %arg11[%c0_35, %c0_36], %39 {strides = array<i32>} : memref<2x32xf32, #tpu.memory_space<vmem>>, vector<2x32xf32>,
    } else {
    }
    return
  }
  func.func @transform_0(%arg0: i32, %arg1: i32) -> (i32, i32, i32) {
    %c0_i32 = arith.constant 0 : i32
    %c0_i32_0 = arith.constant 0 : i32
    return %arg0, %arg1, %c0_i32 : i32, i32, i32
  }
  func.func @transform_1(%arg0: i32, %arg1: i32) -> (i32, i32, i32) {
    %c0_i32 = arith.constant 0 : i32
    %c0_i32_0 = arith.constant 0 : i32
    return %arg0, %arg1, %c0_i32 : i32, i32, i32
  }
  func.func @transform_2(%arg0: i32, %arg1: i32) -> (i32, i32) {
    %c0_i32 = arith.constant 0 : i32
    %c0_i32_0 = arith.constant 0 : i32
    %c0_i32_1 = arith.constant 0 : i32
    return %c0_i32, %c0_i32_0 : i32, i32
  }
  func.func @transform_3(%arg0: i32, %arg1: i32) -> (i32, i32) {
    %c0_i32 = arith.constant 0 : i32
    %c0_i32_0 = arith.constant 0 : i32
    %c0_i32_1 = arith.constant 0 : i32
    return %c0_i32, %c0_i32_0 : i32, i32
  }
  func.func @transform_4(%arg0: i32, %arg1: i32) -> (i32, i32) {
    %c0_i32 = arith.constant 0 : i32
    %c0_i32_0 = arith.constant 0 : i32
    %c0_i32_1 = arith.constant 0 : i32
    return %c0_i32, %c0_i32_0 : i32, i32
  }
  func.func @transform_5(%arg0: i32, %arg1: i32) -> (i32, i32) {
    %c0_i32 = arith.constant 0 : i32
    %c0_i32_0 = arith.constant 0 : i32
    %c0_i32_1 = arith.constant 0 : i32
    return %c0_i32, %c0_i32_0 : i32, i32
  }
  func.func @transform_6(%arg0: i32, %arg1: i32) -> (i32, i32) {
    %c0_i32 = arith.constant 0 : i32
    %c0_i32_0 = arith.constant 0 : i32
    %c0_i32_1 = arith.constant 0 : i32
    return %c0_i32, %c0_i32_0 : i32, i32
  }
  func.func @transform_7(%arg0: i32, %arg1: i32) -> (i32, i32) {
    %c0_i32 = arith.constant 0 : i32
    %c0_i32_0 = arith.constant 0 : i32
    %c0_i32_1 = arith.constant 0 : i32
    return %c0_i32, %c0_i32_0 : i32, i32
  }
  func.func @transform_8(%arg0: i32, %arg1: i32) -> (i32, i32) {
    %c0_i32 = arith.constant 0 : i32
    %c0_i32_0 = arith.constant 0 : i32
    %c0_i32_1 = arith.constant 0 : i32
    return %c0_i32, %c0_i32_0 : i32, i32
  }
  func.func @transform_9(%arg0: i32, %arg1: i32) -> (i32, i32) {
    %c0_i32 = arith.constant 0 : i32
    %c0_i32_0 = arith.constant 0 : i32
    return %arg0, %c0_i32 : i32, i32
  }
}

module attributes {stable_mosaic.version = 11 : i64} {
  func.func @kernel(%arg0: i32, %arg1: i32, %arg2: memref<2x8x3xf32, #tpu.memory_space<vmem>>, %arg3: memref<2x8x2xf32, #tpu.memory_space<vmem>>, %arg4: memref<3x32xf32, #tpu.memory_space<vmem>>, %arg5: memref<2x32xf32, #tpu.memory_space<vmem>>, %arg6: memref<1x32xf32, #tpu.memory_space<vmem>>, %arg7: memref<32x32xf32, #tpu.memory_space<vmem>>, %arg8: memref<1x32xf32, #tpu.memory_space<vmem>>, %arg9: memref<32x32xf32, #tpu.memory_space<vmem>>, %arg10: memref<1x32xf32, #tpu.memory_space<vmem>>, %arg11: memref<2x32xf32, #tpu.memory_space<vmem>>, %arg12: memref<2x32xf32, #tpu.memory_space<vmem>>) attributes {dimension_semantics = [#tpu.dimension_semantics<parallel>, #tpu.dimension_semantics<arbitrary>], iteration_bounds = array<i64: 1, 1>, scalar_prefetch = 0 : i64, scratch_operands = 1 : i64, tpu.core_type = #tpu.core_type<tc>, window_params = [{transform_indices = @transform_0, window_bounds = array<i64: 2, 8, 3>}, {transform_indices = @transform_1, window_bounds = array<i64: 2, 8, 2>}, {pipeline_mode = #tpu.pipeline_mode<synchronous>, transform_indices = @transform_2, window_bounds = array<i64: 3, 32>}, {pipeline_mode = #tpu.pipeline_mode<synchronous>, transform_indices = @transform_3, window_bounds = array<i64: 2, 32>}, {pipeline_mode = #tpu.pipeline_mode<synchronous>, transform_indices = @transform_4, window_bounds = array<i64: 1, 32>}, {pipeline_mode = #tpu.pipeline_mode<synchronous>, transform_indices = @transform_5, window_bounds = array<i64: 32, 32>}, {pipeline_mode = #tpu.pipeline_mode<synchronous>, transform_indices = @transform_6, window_bounds = array<i64: 1, 32>}, {pipeline_mode = #tpu.pipeline_mode<synchronous>, transform_indices = @transform_7, window_bounds = array<i64: 32, 32>}, {pipeline_mode = #tpu.pipeline_mode<synchronous>, transform_indices = @transform_8, window_bounds = array<i64: 1, 32>}, {transform_indices = @transform_9, window_bounds = array<i64: 2, 32>}]} {
    %c0 = arith.constant 0 : index
    %c0_0 = arith.constant 0 : index
    %0 = vector.load %arg4[%c0, %c0_0] : memref<3x32xf32, #tpu.memory_space<vmem>>, vector<3x32xf32>
    %c0_1 = arith.constant 0 : index
    %c0_2 = arith.constant 0 : index
    %1 = vector.load %arg5[%c0_1, %c0_2] : memref<2x32xf32, #tpu.memory_space<vmem>>, vector<2x32xf32>
    %c0_3 = arith.constant 0 : index
    %c0_4 = arith.constant 0 : index
    %c0_5 = arith.constant 0 : index
    %2 = vector.load %arg2[%c0_3, %c0_4, %c0_5] : memref<2x8x3xf32, #tpu.memory_space<vmem>>, vector<2x8x3xf32>
    %3 = vector.shape_cast %2 : vector<2x8x3xf32> to vector<16x3xf32>
    %c0_6 = arith.constant 0 : index
    %c0_7 = arith.constant 0 : index
    %c0_8 = arith.constant 0 : index
    %4 = vector.load %arg3[%c0_6, %c0_7, %c0_8] : memref<2x8x2xf32, #tpu.memory_space<vmem>>, vector<2x8x2xf32>
    %5 = vector.shape_cast %4 : vector<2x8x2xf32> to vector<16x2xf32>
    %cst = arith.constant dense<0.000000e+00> : vector<16x32xf32>
    %6 = tpu.matmul %3, %0, %cst {dimension_numbers = #tpu.dot_dimension_numbers<[1], [0], [0], [1], [0, 0, 1, 1], [], []>} : vector<16x3xf32>, vector<3x32xf32>, vector<16x32xf32> -> vector<16x32xf32>
    %cst_9 = arith.constant dense<0.000000e+00> : vector<16x32xf32>
    %7 = tpu.matmul %5, %1, %cst_9 {dimension_numbers = #tpu.dot_dimension_numbers<[1], [0], [0], [1], [0, 0, 1, 1], [], []>} : vector<16x2xf32>, vector<2x32xf32>, vector<16x32xf32> -> vector<16x32xf32>
    %8 = arith.addf %6, %7 : vector<16x32xf32>
    %c0_10 = arith.constant 0 : index
    %c0_11 = arith.constant 0 : index
    %9 = vector.load %arg6[%c0_10, %c0_11] : memref<1x32xf32, #tpu.memory_space<vmem>>, vector<1x32xf32>
    %10 = vector.broadcast %9 : vector<1x32xf32> to vector<16x32xf32>
    %11 = arith.addf %8, %10 : vector<16x32xf32>
    %cst_12 = arith.constant 0.000000e+00 : f32
    %12 = vector.broadcast %cst_12 : f32 to vector<16x32xf32>
    %13 = arith.maximumf %11, %12 : vector<16x32xf32>
    %c0_13 = arith.constant 0 : index
    %c0_14 = arith.constant 0 : index
    %14 = vector.load %arg7[%c0_13, %c0_14] : memref<32x32xf32, #tpu.memory_space<vmem>>, vector<32x32xf32>
    %c0_15 = arith.constant 0 : index
    %c0_16 = arith.constant 0 : index
    %15 = vector.load %arg8[%c0_15, %c0_16] : memref<1x32xf32, #tpu.memory_space<vmem>>, vector<1x32xf32>
    %cst_17 = arith.constant dense<0.000000e+00> : vector<16x32xf32>
    %16 = tpu.matmul %13, %14, %cst_17 {dimension_numbers = #tpu.dot_dimension_numbers<[1], [0], [0], [1], [0, 0, 1, 1], [], []>} : vector<16x32xf32>, vector<32x32xf32>, vector<16x32xf32> -> vector<16x32xf32>
    %17 = vector.broadcast %15 : vector<1x32xf32> to vector<16x32xf32>
    %18 = arith.addf %16, %17 : vector<16x32xf32>
    %cst_18 = arith.constant 0.000000e+00 : f32
    %19 = vector.broadcast %cst_18 : f32 to vector<16x32xf32>
    %20 = arith.maximumf %18, %19 : vector<16x32xf32>
    %21 = vector.shape_cast %20 : vector<16x32xf32> to vector<2x8x32xf32>
    %cst_19 = arith.constant dense<0.000000e+00> : vector<2x32xf32>
    %22 = vector.multi_reduction <add>, %21, %cst_19 [1] : vector<2x8x32xf32> to vector<2x32xf32>
    %c0_i32 = arith.constant 0 : i32
    %23 = arith.cmpi eq, %arg1, %c0_i32 : i32
    %24 = arith.extui %23 : i1 to i32
    %c0_i32_20 = arith.constant 0 : i32
    %25 = arith.cmpi ne, %24, %c0_i32_20 : i32
    scf.if %25 {
      %cst_27 = arith.constant 0.000000e+00 : f32
      %32 = vector.broadcast %cst_27 : f32 to vector<2x32xf32>
      %c0_28 = arith.constant 0 : index
      %c0_29 = arith.constant 0 : index
      %33 = vector.load %arg12[%c0_28, %c0_29] : memref<2x32xf32, #tpu.memory_space<vmem>>, vector<2x32xf32>
      tpu.vector_store %arg12[%c0_28, %c0_29], %32 {strides = array<i32>} : memref<2x32xf32, #tpu.memory_space<vmem>>, vector<2x32xf32>,
    } else {
    }
    %c0_21 = arith.constant 0 : index
    %c0_22 = arith.constant 0 : index
    %26 = vector.load %arg12[%c0_21, %c0_22] : memref<2x32xf32, #tpu.memory_space<vmem>>, vector<2x32xf32>
    %27 = arith.addf %26, %22 : vector<2x32xf32>
    %c0_23 = arith.constant 0 : index
    %c0_24 = arith.constant 0 : index
    %28 = vector.load %arg12[%c0_23, %c0_24] : memref<2x32xf32, #tpu.memory_space<vmem>>, vector<2x32xf32>
    tpu.vector_store %arg12[%c0_23, %c0_24], %27 {strides = array<i32>} : memref<2x32xf32, #tpu.memory_space<vmem>>, vector<2x32xf32>,
    %c0_i32_25 = arith.constant 0 : i32
    %29 = arith.cmpi eq, %arg1, %c0_i32_25 : i32
    %30 = arith.extui %29 : i1 to i32
    %c0_i32_26 = arith.constant 0 : i32
    %31 = arith.cmpi ne, %30, %c0_i32_26 : i32
    scf.if %31 {
      %c0_27 = arith.constant 0 : index
      %c0_28 = arith.constant 0 : index
      %32 = vector.load %arg12[%c0_27, %c0_28] : memref<2x32xf32, #tpu.memory_space<vmem>>, vector<2x32xf32>
      %cst_29 = arith.constant 1.250000e-01 : f32
      %33 = vector.broadcast %cst_29 : f32 to vector<2x32xf32>
      %34 = arith.mulf %32, %33 : vector<2x32xf32>
      %c0_30 = arith.constant 0 : index
      %c0_31 = arith.constant 0 : index
      %35 = vector.load %arg9[%c0_30, %c0_31] : memref<32x32xf32, #tpu.memory_space<vmem>>, vector<32x32xf32>
      %cst_32 = arith.constant dense<0.000000e+00> : vector<2x32xf32>
      %36 = tpu.matmul %34, %35, %cst_32 {dimension_numbers = #tpu.dot_dimension_numbers<[1], [0], [0], [1], [0, 0, 1, 1], [], []>} : vector<2x32xf32>, vector<32x32xf32>, vector<2x32xf32> -> vector<2x32xf32>
      %c0_33 = arith.constant 0 : index
      %c0_34 = arith.constant 0 : index
      %37 = vector.load %arg10[%c0_33, %c0_34] : memref<1x32xf32, #tpu.memory_space<vmem>>, vector<1x32xf32>
      %38 = vector.broadcast %37 : vector<1x32xf32> to vector<2x32xf32>
      %39 = arith.addf %36, %38 : vector<2x32xf32>
      %c0_35 = arith.constant 0 : index
      %c0_36 = arith.constant 0 : index
      %40 = vector.load %arg11[%c0_35, %c0_36] : memref<2x32xf32, #tpu.memory_space<vmem>>, vector<2x32xf32>
      tpu.vector_store %arg11[%c0_35, %c0_36], %39 {strides = array<i32>} : memref<2x32xf32, #tpu.memory_space<vmem>>, vector<2x32xf32>,
    } else {
    }
    return
  }
  func.func @transform_0(%arg0: i32, %arg1: i32) -> (i32, i32, i32) {
    %c0_i32 = arith.constant 0 : i32
    %c0_i32_0 = arith.constant 0 : i32
    return %arg0, %arg1, %c0_i32 : i32, i32, i32
  }
  func.func @transform_1(%arg0: i32, %arg1: i32) -> (i32, i32, i32) {
    %c0_i32 = arith.constant 0 : i32
    %c0_i32_0 = arith.constant 0 : i32
    return %arg0, %arg1, %c0_i32 : i32, i32, i32
  }
  func.func @transform_2(%arg0: i32, %arg1: i32) -> (i32, i32) {
    %c0_i32 = arith.constant 0 : i32
    %c0_i32_0 = arith.constant 0 : i32
    %c0_i32_1 = arith.constant 0 : i32
    return %c0_i32, %c0_i32_0 : i32, i32
  }
  func.func @transform_3(%arg0: i32, %arg1: i32) -> (i32, i32) {
    %c0_i32 = arith.constant 0 : i32
    %c0_i32_0 = arith.constant 0 : i32
    %c0_i32_1 = arith.constant 0 : i32
    return %c0_i32, %c0_i32_0 : i32, i32
  }
  func.func @transform_4(%arg0: i32, %arg1: i32) -> (i32, i32) {
    %c0_i32 = arith.constant 0 : i32
    %c0_i32_0 = arith.constant 0 : i32
    %c0_i32_1 = arith.constant 0 : i32
    return %c0_i32, %c0_i32_0 : i32, i32
  }
  func.func @transform_5(%arg0: i32, %arg1: i32) -> (i32, i32) {
    %c0_i32 = arith.constant 0 : i32
    %c0_i32_0 = arith.constant 0 : i32
    %c0_i32_1 = arith.constant 0 : i32
    return %c0_i32, %c0_i32_0 : i32, i32
  }
  func.func @transform_6(%arg0: i32, %arg1: i32) -> (i32, i32) {
    %c0_i32 = arith.constant 0 : i32
    %c0_i32_0 = arith.constant 0 : i32
    %c0_i32_1 = arith.constant 0 : i32
    return %c0_i32, %c0_i32_0 : i32, i32
  }
  func.func @transform_7(%arg0: i32, %arg1: i32) -> (i32, i32) {
    %c0_i32 = arith.constant 0 : i32
    %c0_i32_0 = arith.constant 0 : i32
    %c0_i32_1 = arith.constant 0 : i32
    return %c0_i32, %c0_i32_0 : i32, i32
  }
  func.func @transform_8(%arg0: i32, %arg1: i32) -> (i32, i32) {
    %c0_i32 = arith.constant 0 : i32
    %c0_i32_0 = arith.constant 0 : i32
    %c0_i32_1 = arith.constant 0 : i32
    return %c0_i32, %c0_i32_0 : i32, i32
  }
  func.func @transform_9(%arg0: i32, %arg1: i32) -> (i32, i32) {
    %c0_i32 = arith.constant 0 : i32
    %c0_i32_0 = arith.constant 0 : i32
    return %arg0, %c0_i32 : i32, i32
  }
}

</mosaic_0001>

<bundles_post_ra>
// kernel: tpu_custom_call.1
= control target key start
LH: loop header
LB: loop body
LE: loop exit
PB: predicated region body
PF: predicated region fallthrough
CT: control target
= control target key end

     0   :  { %14 = vsyncpa [#allocation4], 0  ;;  %s685_s0 = inlined_call_operand.vmem [shape: f32[2,8,3], index: 0, kind: input, shape index: {}]   ;;  %s686_s1 = inlined_call_operand.vmem [shape: f32[2,8,2], index: 1, kind: input, shape index: {}]   ;;  %s687_s2 = inlined_call_operand.vmem [shape: f32[3,32], index: 2, kind: input, shape index: {}]   ;;  %s688_s3 = inlined_call_operand.vmem [shape: f32[2,32], index: 3, kind: input, shape index: {}]   ;;  %s689_s4 = inlined_call_operand.vmem [shape: f32[1,32], index: 4, kind: input, shape index: {}]   ;;  %s690_s5 = inlined_call_operand.vmem [shape: f32[32,32], index: 5, kind: input, shape index: {}]   ;;  %s691_s6 = inlined_call_operand.vmem [shape: f32[1,32], index: 6, kind: input, shape index: {}]   ;;  %s692_s7 = inlined_call_operand.hbm [shape: f32[32,32], index: 7, kind: input, shape index: {}]   ;;  %s693_s8 = inlined_call_operand.vmem [shape: f32[1,32], index: 8, kind: input, shape index: {}]   ;;  %s694_s9 = inlined_call_operand.hbm [shape: f32[2,32], index: 9, kind: output, shape index: {}]  }
   0x1   :  { %15 = vsyncpa [#allocation5], 0  ;;  %s576_s30 = smov [#allocation3]  }
   0x2   :  { %s35_s10 = sshll.u32 %s576_s30, 4  ;;  %s36_s10 = int_to_ptr.vmem [resolvable:$true] %s35_s10 }
   0x3   :  { %s540_s11 = scalar_lea.vmem %s36_s10, 512  ;;  %p545_p1 = scmp.lt.s32.totalorder %s36_s10, %s36_s10 }
   0x4   :  { %p541_p0 = scmp.ne.s32.totalorder %s36_s10, %s540_s11  ;;  %p546_p2 = scmp.lt.s32.totalorder %s540_s11, %s540_s11 }
   0x6   :  { %p547_p3 = por %p546_p2, %p545_p1 }
   0x8   :  { %p548_p4 = pnand %p547_p3, %p541_p0 }
   0xa   :  { %551 = shalt.err (!%p548_p4)
}
   0xb   :  { %s577_s12 = smov 128   ;;  %s578_s13 = smov 8  }
   0xc   :  { %41 = dma.hbm_to_vmem [thread:$0]  %s692_s7, 512, %s36_s10, [#allocation4], %s577_s12, %s577_s12, %s578_s13  }
   0xd   :  { %572 = dma.done.wait [#allocation4], 512  }
   0xe   :  { %573 = vsyncadd [#allocation4], 4294966784  ;;  %vm60_vm0 = vcmask 1041408   ;;  %vm146_vm1 = vcmask 1042432   ;;  %vm53_vm2 = vcmask 15360   ;;  %v51_v2 = vld [vmem:[%s686_s1] sm:$0xff] }
   0xf   :  { %v48_v0 = vld [vmem:[%s688_s3] sm:$0x3]  ;;  %vm139_vm3 = vcmask 23552   ;;  %v52_v4 = vld [vmem:[%s686_s1 + $0x8] sm:$0xff]  ;;  %496 = vmatprep.mubr.msk.f32.mxu0 %vm53_vm2, %v51_v2  ;;  %v239_v6 = vld [vmem:[%s690_s5 + $0x18] sm:$0xff]  ;;  %vm247_vm4 = vcmask 261120  }
  0x10   :  { %v47_v1 = vld [vmem:[%s687_s2] sm:$0x7]  ;;  %494 = vmatprep.subr.msk.mxu0 %vm60_vm0, %v48_v0  ;;  %v50_v5 = vld [vmem:[%s685_s0 + $0x8] sm:$0xff]  ;;  %v238_v7 = vld [vmem:[%s690_s5 + $0x10] sm:$0xff]  ;;  %vm349_vm5 = vcmask 254976   ;;  %v579_v21 = vmov 0.0  }
  0x11   :  { %499 = vmatprep.subr.msk.mxu1 %vm146_vm1, %v47_v1  ;;  %v49_v3 = vld [vmem:[%s685_s0] sm:$0xff]  ;;  %495 = vmatpush3.msk.msra.mxu0 %vm60_vm0, %v48_v0  ;;  %v237_v8 = vld [vmem:[%s690_s5 + $0x8] sm:$0xff]  ;;  %350 = vst.msk [vmem:[#allocation2] sm:$0x3] %vm349_vm5, %v579_v21  ;;  %v367_v23 = vld [vmem:[#allocation3 + $0x10] sm:$0xff]  ;;  %vm580_vm6 = vmmov 0  }
  0x12   :  { %500 = vmatpush3.msk.msra.mxu1 %vm146_vm1, %v47_v1  ;;  %501 = vmatprep.mubr.msk.f32.mxu1 %vm139_vm3, %v49_v3  ;;  %v236_v9 = vld [vmem:[%s690_s5] sm:$0xff]  ;;  %v366_v24 = vld [vmem:[#allocation3 + $0x8] sm:$0xff]  ;;  %vm354_vm7 = vcmask 1041409   ;;  %s581_s13 = smov [#allocation6]  }
  0x13   :  { %497 = vmatmul.mubr.msk.f32.vlgmr.msra.gmra.mxu0 %vm53_vm2, %v52_v4  ;;  %502 = vmatmul.mubr.msk.f32.vlgmr.msra.gmra.mxu1 %vm139_vm3, %v50_v5  ;;  %v471_v13 = vld [vmem:[%s689_s4] ss:$0 sm:$0xff]  ;;  %v365_v25 = vld [vmem:[#allocation3] sm:$0xff]  ;;  %s456_s14 = sshll.u32 %s581_s13, 4  ;;  %s457_s14 = int_to_ptr.vmem [resolvable:$true] %s456_s14 }
  0x14   :  { %504 = vmatprep.subr.mxu0 %v239_v6  ;;  %515 = vmatprep.subr.mxu1 %v579_v21  ;;  %v368_v22 = vld [vmem:[#allocation3 + $0x18] sm:$0xff]  ;;  %s552_s15 = scalar_lea.vmem %s457_s14, 32  ;;  %p557_p6 = scmp.lt.s32.totalorder %s457_s14, %s457_s14 }
  0x15   :  { %505 = vmatpush3.msra.mxu0 %v239_v6  ;;  %516 = vmatpush3.msra.mxu1 %v368_v22  ;;  %v472_v26 = vld [vmem:[%s691_s6] ss:$0 sm:$0xff]  ;;  %p553_p5 = scmp.ne.s32.totalorder %s457_s14, %s552_s15  ;;  %p558_p7 = scmp.lt.s32.totalorder %s552_s15, %s552_s15 }
  0x16   :  { %506 = vmatprep.subr.mxu0 %v238_v7  ;;  %523 = vmatprep.mubr.msk.f32.mxu1 %vm580_vm6, %v579_v21  ;;  %v475_v52 = vld [vmem:[%s693_s8] ss:$0 sm:$0xff] }
  0x17   :  { %507 = vmatpush3.msra.mxu0 %v238_v7  ;;  %517 = vmatprep.subr.mxu1 %v579_v21  ;;  %p559_p8 = por %p558_p7, %p557_p6 }
  0x18   :  { %508 = vmatprep.subr.mxu0 %v237_v8  ;;  %518 = vmatpush3.msra.mxu1 %v367_v23  ;;  %v351_v47 = vld [vmem:[#allocation2] sm:$0x3] }
  0x19   :  { %509 = vmatpush3.msra.mxu0 %v237_v8  ;;  %519 = vmatprep.subr.mxu1 %v579_v21  ;;  %p560_p9 = pnand %p559_p8, %p553_p5 }
  0x1a   :  { %510 = vmatprep.subr.mxu0 %v236_v9  ;;  %520 = vmatpush3.msra.mxu1 %v366_v24 }
  0x1b   :  { %511 = vmatpush3.msra.mxu0 %v236_v9  ;;  %521 = vmatprep.subr.mxu1 %v579_v21 }
  0x1c   :  { %522 = vmatpush3.msra.mxu1 %v365_v25 }
  0xd3   :  { %v498_v10 = vpop.f32.mrf.mxu0  ;;  %v503_v11 = vpop.f32.mrf.mxu1 }
  0xd4   :  { %v222_v12 = vadd.f32 %v503_v11, %v498_v10 }
  0xd5   :  { %v130_v14 = vpop.f32.mrf.mxu0  ;;  %v216_v15 = vpop.f32.mrf.mxu1 }
  0xd6   :  { %v217_v16 = vadd.f32 %v216_v15, %v130_v14  ;;  %v233_v17 = vadd.f32 %v471_v13, %v222_v12 }
  0xd8   :  { %v232_v18 = vadd.f32 %v471_v13, %v217_v16  ;;  %v235_v20 = vmax.f32 %v233_v17, 0.0 }
  0xda   :  { %v234_v19 = vmax.f32 %v232_v18, 0.0 }
  0xdc   :  { %512 = vmatprep.mubr.msk.f32.mxu0 %vm247_vm4, %v234_v19 }
  0xdd   :  { %513 = vmatmul.mubr.msk.f32.vlgmr.msra.gmra.mxu0 %vm247_vm4, %v235_v20 }
 0x19d   :  { %v514_v27 = vpop.f32.mrf.mxu0 }
 0x19e   :  { %v326_v28 = vadd.f32 %v514_v27, %v472_v26 }
 0x19f   :  { %v320_v29 = vpop.f32.mrf.mxu0 }
 0x1a0   :  { %v330_v30 = vmax.f32 %v326_v28, 0.0  ;;  %v321_v31 = vadd.f32 %v472_v26, %v320_v29 }
 0x1a2   :  { %v338_v32 = vsel %vm247_vm4, %v330_v30, 0.0  ;;  %v329_v33 = vmax.f32 %v321_v31, 0.0 }
 0x1a3   :  { %v339_v34 = vrot.slane %v338_v32, 4 }
 0x1a4   :  { %v331_v35 = vsel %vm247_vm4, %v329_v33, 0.0 }
 0x1a5   :  { %v340_v36 = vadd.f32 %v339_v34, %v338_v32  ;;  %v332_v37 = vrot.slane %v331_v35, 4 }
 0x1a7   :  { %v341_v38 = vrot.slane %v340_v36, 2  ;;  %v333_v39 = vadd.f32 %v332_v37, %v331_v35 }
 0x1a9   :  { %v342_v40 = vadd.f32 %v341_v38, %v340_v36  ;;  %v334_v41 = vrot.slane %v333_v39, 2 }
 0x1ab   :  { %v343_v42 = vrot.slane %v342_v40, 1  ;;  %v335_v43 = vadd.f32 %v334_v41, %v333_v39 }
 0x1ad   :  { %v336_v44 = vrot.slane %v335_v43, 1  ;;  %v344_v45 = vadd.f32 %v343_v42, %v342_v40 }
 0x1af   :  { %v337_v46 = vadd.f32 %v336_v44, %v335_v43 }
 0x1b1   :  { %v355_v48 = vsel %vm354_vm7, %v344_v45, %v337_v46 }
 0x1b2   :  { %v357_v49 = vadd.f32 %v355_v48, %v351_v47 }
 0x1b4   :  { %359 = vst.msk [vmem:[#allocation2] sm:$0x3] %vm349_vm5, %v357_v49 }
 0x1bb   :  { %v363_v50 = vld [vmem:[#allocation2] sm:$0x3] }
 0x1bc   :  { %v364_v51 = vmul.f32 0.125, %v363_v50 }
 0x1be   :  { %524 = vmatmul.mubr.msk.f32.vlgmr.msra.gmra.mxu1 %vm247_vm4, %v364_v51 }
 0x27e   :  { %v445_v53 = vpop.f32.mrf.mxu1 }
 0x27f   :  { %v446_v54 = vadd.f32 %v475_v52, %v445_v53 }
 0x280   :  { %v525_v55 = vpop.f32.mrf.mxu1 }
 0x281   :  { %449 = vst.msk [vmem:[#allocation6] sm:$0x3] %vm349_vm5, %v446_v54 }
 0x282   :  { %563 = shalt.err (!%p560_p9)
}
 0x283   :  { %459 = dma.vmem_to_hbm [thread:$0]  %s457_s14, 32, %s694_s9, [#allocation5]  }
 0x284   :  { %574 = dma.done.wait [#allocation5], 32  }
 0x285   :  { %575 = vsyncadd [#allocation5], 4294967264 }
 0x286   :  { %463 = vsyncpa [#allocation4], 1 }
 0x287   :  { %464 = vsyncpa [#allocation5], 1 }

// kernel: tpu_custom_call.1
= control target key start
LH: loop header
LB: loop body
LE: loop exit
PB: predicated region body
PF: predicated region fallthrough
CT: control target
= control target key end

     0   :  { %14 = vsyncpa [#allocation4], 0  ;;  %s685_s0 = inlined_call_operand.vmem [shape: f32[2,8,3], index: 0, kind: input, shape index: {}]   ;;  %s686_s1 = inlined_call_operand.vmem [shape: f32[2,8,2], index: 1, kind: input, shape index: {}]   ;;  %s687_s2 = inlined_call_operand.vmem [shape: f32[3,32], index: 2, kind: input, shape index: {}]   ;;  %s688_s3 = inlined_call_operand.vmem [shape: f32[2,32], index: 3, kind: input, shape index: {}]   ;;  %s689_s4 = inlined_call_operand.vmem [shape: f32[1,32], index: 4, kind: input, shape index: {}]   ;;  %s690_s5 = inlined_call_operand.vmem [shape: f32[32,32], index: 5, kind: input, shape index: {}]   ;;  %s691_s6 = inlined_call_operand.vmem [shape: f32[1,32], index: 6, kind: input, shape index: {}]   ;;  %s692_s7 = inlined_call_operand.hbm [shape: f32[32,32], index: 7, kind: input, shape index: {}]   ;;  %s693_s8 = inlined_call_operand.vmem [shape: f32[1,32], index: 8, kind: input, shape index: {}]   ;;  %s694_s9 = inlined_call_operand.hbm [shape: f32[2,32], index: 9, kind: output, shape index: {}]  }
   0x1   :  { %15 = vsyncpa [#allocation5], 0  ;;  %s576_s30 = smov [#allocation3]  }
   0x2   :  { %s35_s10 = sshll.u32 %s576_s30, 4  ;;  %s36_s10 = int_to_ptr.vmem [resolvable:$true] %s35_s10 }
   0x3   :  { %s540_s11 = scalar_lea.vmem %s36_s10, 512  ;;  %p545_p1 = scmp.lt.s32.totalorder %s36_s10, %s36_s10 }
   0x4   :  { %p541_p0 = scmp.ne.s32.totalorder %s36_s10, %s540_s11  ;;  %p546_p2 = scmp.lt.s32.totalorder %s540_s11, %s540_s11 }
   0x6   :  { %p547_p3 = por %p546_p2, %p545_p1 }
   0x8   :  { %p548_p4 = pnand %p547_p3, %p541_p0 }
   0xa   :  { %551 = shalt.err (!%p548_p4)
}
   0xb   :  { %s577_s12 = smov 128   ;;  %s578_s13 = smov 8  }
   0xc   :  { %41 = dma.hbm_to_vmem [thread:$0]  %s692_s7, 512, %s36_s10, [#allocation4], %s577_s12, %s577_s12, %s578_s13  }
   0xd   :  { %572 = dma.done.wait [#allocation4], 512  }
   0xe   :  { %573 = vsyncadd [#allocation4], 4294966784  ;;  %vm60_vm0 = vcmask 1041408   ;;  %vm146_vm1 = vcmask 1042432   ;;  %vm53_vm2 = vcmask 15360   ;;  %v51_v2 = vld [vmem:[%s686_s1] sm:$0xff] }
   0xf   :  { %v48_v0 = vld [vmem:[%s688_s3] sm:$0x3]  ;;  %vm139_vm3 = vcmask 23552   ;;  %v52_v4 = vld [vmem:[%s686_s1 + $0x8] sm:$0xff]  ;;  %496 = vmatprep.mubr.msk.f32.mxu0 %vm53_vm2, %v51_v2  ;;  %v239_v6 = vld [vmem:[%s690_s5 + $0x18] sm:$0xff]  ;;  %vm247_vm4 = vcmask 261120  }
  0x10   :  { %v47_v1 = vld [vmem:[%s687_s2] sm:$0x7]  ;;  %494 = vmatprep.subr.msk.mxu0 %vm60_vm0, %v48_v0  ;;  %v50_v5 = vld [vmem:[%s685_s0 + $0x8] sm:$0xff]  ;;  %v238_v7 = vld [vmem:[%s690_s5 + $0x10] sm:$0xff]  ;;  %vm349_vm5 = vcmask 254976   ;;  %v579_v21 = vmov 0.0  }
  0x11   :  { %499 = vmatprep.subr.msk.mxu1 %vm146_vm1, %v47_v1  ;;  %v49_v3 = vld [vmem:[%s685_s0] sm:$0xff]  ;;  %495 = vmatpush3.msk.msra.mxu0 %vm60_vm0, %v48_v0  ;;  %v237_v8 = vld [vmem:[%s690_s5 + $0x8] sm:$0xff]  ;;  %350 = vst.msk [vmem:[#allocation2] sm:$0x3] %vm349_vm5, %v579_v21  ;;  %v367_v23 = vld [vmem:[#allocation3 + $0x10] sm:$0xff]  ;;  %vm580_vm6 = vmmov 0  }
  0x12   :  { %500 = vmatpush3.msk.msra.mxu1 %vm146_vm1, %v47_v1  ;;  %501 = vmatprep.mubr.msk.f32.mxu1 %vm139_vm3, %v49_v3  ;;  %v236_v9 = vld [vmem:[%s690_s5] sm:$0xff]  ;;  %v366_v24 = vld [vmem:[#allocation3 + $0x8] sm:$0xff]  ;;  %vm354_vm7 = vcmask 1041409   ;;  %s581_s13 = smov [#allocation6]  }
  0x13   :  { %497 = vmatmul.mubr.msk.f32.vlgmr.msra.gmra.mxu0 %vm53_vm2, %v52_v4  ;;  %502 = vmatmul.mubr.msk.f32.vlgmr.msra.gmra.mxu1 %vm139_vm3, %v50_v5  ;;  %v471_v13 = vld [vmem:[%s689_s4] ss:$0 sm:$0xff]  ;;  %v365_v25 = vld [vmem:[#allocation3] sm:$0xff]  ;;  %s456_s14 = sshll.u32 %s581_s13, 4  ;;  %s457_s14 = int_to_ptr.vmem [resolvable:$true] %s456_s14 }
  0x14   :  { %504 = vmatprep.subr.mxu0 %v239_v6  ;;  %515 = vmatprep.subr.mxu1 %v579_v21  ;;  %v368_v22 = vld [vmem:[#allocation3 + $0x18] sm:$0xff]  ;;  %s552_s15 = scalar_lea.vmem %s457_s14, 32  ;;  %p557_p6 = scmp.lt.s32.totalorder %s457_s14, %s457_s14 }
  0x15   :  { %505 = vmatpush3.msra.mxu0 %v239_v6  ;;  %516 = vmatpush3.msra.mxu1 %v368_v22  ;;  %v472_v26 = vld [vmem:[%s691_s6] ss:$0 sm:$0xff]  ;;  %p553_p5 = scmp.ne.s32.totalorder %s457_s14, %s552_s15  ;;  %p558_p7 = scmp.lt.s32.totalorder %s552_s15, %s552_s15 }
  0x16   :  { %506 = vmatprep.subr.mxu0 %v238_v7  ;;  %523 = vmatprep.mubr.msk.f32.mxu1 %vm580_vm6, %v579_v21  ;;  %v475_v52 = vld [vmem:[%s693_s8] ss:$0 sm:$0xff] }
  0x17   :  { %507 = vmatpush3.msra.mxu0 %v238_v7  ;;  %517 = vmatprep.subr.mxu1 %v579_v21  ;;  %p559_p8 = por %p558_p7, %p557_p6 }
  0x18   :  { %508 = vmatprep.subr.mxu0 %v237_v8  ;;  %518 = vmatpush3.msra.mxu1 %v367_v23  ;;  %v351_v47 = vld [vmem:[#allocation2] sm:$0x3] }
  0x19   :  { %509 = vmatpush3.msra.mxu0 %v237_v8  ;;  %519 = vmatprep.subr.mxu1 %v579_v21  ;;  %p560_p9 = pnand %p559_p8, %p553_p5 }
  0x1a   :  { %510 = vmatprep.subr.mxu0 %v236_v9  ;;  %520 = vmatpush3.msra.mxu1 %v366_v24 }
  0x1b   :  { %511 = vmatpush3.msra.mxu0 %v236_v9  ;;  %521 = vmatprep.subr.mxu1 %v579_v21 }
  0x1c   :  { %522 = vmatpush3.msra.mxu1 %v365_v25 }
  0xd3   :  { %v498_v10 = vpop.f32.mrf.mxu0  ;;  %v503_v11 = vpop.f32.mrf.mxu1 }
  0xd4   :  { %v222_v12 = vadd.f32 %v503_v11, %v498_v10 }
  0xd5   :  { %v130_v14 = vpop.f32.mrf.mxu0  ;;  %v216_v15 = vpop.f32.mrf.mxu1 }
  0xd6   :  { %v217_v16 = vadd.f32 %v216_v15, %v130_v14  ;;  %v233_v17 = vadd.f32 %v471_v13, %v222_v12 }
  0xd8   :  { %v232_v18 = vadd.f32 %v471_v13, %v217_v16  ;;  %v235_v20 = vmax.f32 %v233_v17, 0.0 }
  0xda   :  { %v234_v19 = vmax.f32 %v232_v18, 0.0 }
  0xdc   :  { %512 = vmatprep.mubr.msk.f32.mxu0 %vm247_vm4, %v234_v19 }
  0xdd   :  { %513 = vmatmul.mubr.msk.f32.vlgmr.msra.gmra.mxu0 %vm247_vm4, %v235_v20 }
 0x19d   :  { %v514_v27 = vpop.f32.mrf.mxu0 }
 0x19e   :  { %v326_v28 = vadd.f32 %v514_v27, %v472_v26 }
 0x19f   :  { %v320_v29 = vpop.f32.mrf.mxu0 }
 0x1a0   :  { %v330_v30 = vmax.f32 %v326_v28, 0.0  ;;  %v321_v31 = vadd.f32 %v472_v26, %v320_v29 }
 0x1a2   :  { %v338_v32 = vsel %vm247_vm4, %v330_v30, 0.0  ;;  %v329_v33 = vmax.f32 %v321_v31, 0.0 }
 0x1a3   :  { %v339_v34 = vrot.slane %v338_v32, 4 }
 0x1a4   :  { %v331_v35 = vsel %vm247_vm4, %v329_v33, 0.0 }
 0x1a5   :  { %v340_v36 = vadd.f32 %v339_v34, %v338_v32  ;;  %v332_v37 = vrot.slane %v331_v35, 4 }
 0x1a7   :  { %v341_v38 = vrot.slane %v340_v36, 2  ;;  %v333_v39 = vadd.f32 %v332_v37, %v331_v35 }
 0x1a9   :  { %v342_v40 = vadd.f32 %v341_v38, %v340_v36  ;;  %v334_v41 = vrot.slane %v333_v39, 2 }
 0x1ab   :  { %v343_v42 = vrot.slane %v342_v40, 1  ;;  %v335_v43 = vadd.f32 %v334_v41, %v333_v39 }
 0x1ad   :  { %v336_v44 = vrot.slane %v335_v43, 1  ;;  %v344_v45 = vadd.f32 %v343_v42, %v342_v40 }
 0x1af   :  { %v337_v46 = vadd.f32 %v336_v44, %v335_v43 }
 0x1b1   :  { %v355_v48 = vsel %vm354_vm7, %v344_v45, %v337_v46 }
 0x1b2   :  { %v357_v49 = vadd.f32 %v355_v48, %v351_v47 }
 0x1b4   :  { %359 = vst.msk [vmem:[#allocation2] sm:$0x3] %vm349_vm5, %v357_v49 }
 0x1bb   :  { %v363_v50 = vld [vmem:[#allocation2] sm:$0x3] }
 0x1bc   :  { %v364_v51 = vmul.f32 0.125, %v363_v50 }
 0x1be   :  { %524 = vmatmul.mubr.msk.f32.vlgmr.msra.gmra.mxu1 %vm247_vm4, %v364_v51 }
 0x27e   :  { %v445_v53 = vpop.f32.mrf.mxu1 }
 0x27f   :  { %v446_v54 = vadd.f32 %v475_v52, %v445_v53 }
 0x280   :  { %v525_v55 = vpop.f32.mrf.mxu1 }
 0x281   :  { %449 = vst.msk [vmem:[#allocation6] sm:$0x3] %vm349_vm5, %v446_v54 }
 0x282   :  { %563 = shalt.err (!%p560_p9)
}
 0x283   :  { %459 = dma.vmem_to_hbm [thread:$0]  %s457_s14, 32, %s694_s9, [#allocation5]  }
 0x284   :  { %574 = dma.done.wait [#allocation5], 32  }
 0x285   :  { %575 = vsyncadd [#allocation5], 4294967264 }
 0x286   :  { %463 = vsyncpa [#allocation4], 1 }
 0x287   :  { %464 = vsyncpa [#allocation5], 1 }

</bundles_post_ra>
